<compile_context>
chip_gen: v5e
topology: v5e:2x2
jax: 0.10.0
libtpu: 0.0.40
codegen_flags: <defaults>
</compile_context>

<pallas_src>
import functools

import jax
import jax.numpy as jnp
from jax.experimental import pallas as pl
from jax.experimental.pallas import tpu as pltpu


# ----------------------------------------------------------------------------
# Kernel
# ----------------------------------------------------------------------------
def _head_kernel(feat_ref, w_eff_ref, b_eff_ref, out_ref, pooled_acc,
                 *, inv_seq_len, chunk_rows):
    """One (batch_tile, seq_tile) grid step.

    feat_ref:   [b_tile, s_tile, H]  streamed feature tile (f32 or bf16)
    w_eff_ref:  [H, OUT_W]           resident folded weight
    b_eff_ref:  [1, OUT_W]           resident folded bias
    out_ref:    [b_tile, OUT_W]      resident across the seq (reduction) axis
    pooled_acc: [b_tile, H] f32      VMEM scratch accumulator
    """
    si = pl.program_id(1)

    @pl.when(si == 0)
    def _init():
        pooled_acc[...] = jnp.zeros_like(pooled_acc)

    s_tile = feat_ref.shape[1]
    n_chunks = s_tile // chunk_rows        # chunk_rows always divides s_tile

    if n_chunks == 1:
        pooled_acc[...] += jnp.sum(feat_ref[...].astype(jnp.float32), axis=1)
    else:
        # Chunked accumulation: upcast only a sublane-aligned slice at a time,
        # so bf16 inputs never need a full-tile f32 temporary in VMEM.
        @pl.loop(0, n_chunks)
        def _accumulate(c):
            start = pl.multiple_of(c * chunk_rows, chunk_rows)
            sl = feat_ref[:, pl.ds(start, chunk_rows), :].astype(jnp.float32)
            pooled_acc[...] += jnp.sum(sl, axis=1)

    @pl.when(si == pl.num_programs(1) - 1)
    def _finalize():
        pooled = pooled_acc[...] * inv_seq_len                  # mean over seq
        logits = jnp.dot(pooled, w_eff_ref[...],
                         preferred_element_type=jnp.float32) + b_eff_ref[...]
        out_ref[...] = logits.astype(out_ref.dtype)


# ----------------------------------------------------------------------------
# Tiling helpers
# ----------------------------------------------------------------------------
def _vmem_capacity_bytes():
    """Physical per-core VMEM; conservative 64 MiB (v7x) if the query fails."""
    try:
        cap = getattr(pltpu.get_tpu_info(), "vmem_capacity_bytes", None)
        if cap:
            return int(cap)
    except Exception:
        pass
    return 64 << 20


def _sublane_step(dtype):
    """Second-minor alignment step for the dtype's sublane packing."""
    return {4: 8, 2: 16, 1: 32}.get(jnp.dtype(dtype).itemsize, 8)


def _pick_batch_tile(batch, cap):
    """Largest multiple-of-8 divisor of `batch` <= cap (<=128), preferring
    >= 2 batch tiles so both v7x TensorCores get work; full-dim block for
    batches not divisible by 8."""
    if batch % 8 != 0:
        return batch
    cap = max(8, min(cap, 128, batch))
    cands = [d for d in range(8, cap + 1, 8) if batch % d == 0]
    if not cands:
        return 8
    multi = [d for d in cands if batch // d >= 2]
    return max(multi) if multi else max(cands)


def _pick_seq_tile(seq, step, target_rows):
    """Largest multiple-of-`step` divisor of seq <= target_rows; gracefully
    falls back to the smallest aligned divisor (never a VMEM-busting full-seq
    block) unless no aligned divisor exists at all."""
    if seq <= step:
        return seq
    divs = [d for d in range(step, seq + 1, step) if seq % d == 0]
    if not divs:
        return seq                      # ragged seq length: full-dim block
    fitting = [d for d in divs if d <= target_rows]
    return max(fitting) if fitting else min(divs)


# ----------------------------------------------------------------------------
# Wrapper
# ----------------------------------------------------------------------------
def classification_head(features, w_dense, b_dense, w_reg, b_reg,
                        *, feat_tile_budget_bytes=None):
    """features: [B, S, H] (f32 or bf16). Weights in [in, out] layout, biases
    as [1, out]. Returns logits [B, 2] (f32)."""
    B, S, H = features.shape
    n_out = w_reg.shape[1]
    itemsize = jnp.dtype(features.dtype).itemsize

    # --- eval-mode fold of dense + (identity dropout) + regressor -----------
    w_eff = w_dense.astype(jnp.float32) @ w_reg.astype(jnp.float32)       # [H, 2]
    b_eff = (b_dense.astype(jnp.float32) @ w_reg.astype(jnp.float32)
             + b_reg.astype(jnp.float32))                                 # [1, 2]

    # Pad to a lane-dense output width (unmasked stores, full MXU lanes).
    OUT_W = max(128, ((n_out + 127) // 128) * 128)
    w_eff_p = jnp.zeros((H, OUT_W), jnp.float32).at[:, :n_out].set(w_eff)
    b_eff_p = jnp.zeros((1, OUT_W), jnp.float32).at[:, :n_out].set(b_eff)

    # --- generation-aware tiling ---------------------------------------------
    vmem_cap = _vmem_capacity_bytes()
    if feat_tile_budget_bytes is None:
        # ~20 MiB feature tiles on 128 MiB parts (v5e/v6e), ~10 MiB on v7x.
        feat_tile_budget_bytes = (20 << 20) if vmem_cap >= (100 << 20) else (10 << 20)

    step = _sublane_step(features.dtype)
    rows_budget = max(8 * step, feat_tile_budget_bytes // max(1, H * itemsize))
    b_tile = _pick_batch_tile(B, cap=max(8, rows_budget // step))
    s_tile = _pick_seq_tile(S, step, max(step, rows_budget // b_tile))
    chunk_rows = step if s_tile % step == 0 else s_tile
    grid = (B // b_tile, S // s_tile)

    # --- VMEM budget: double-buffered streams + resident weights + temps ----
    feat_tile_bytes = b_tile * s_tile * H * itemsize
    chunk_f32_bytes = b_tile * chunk_rows * H * 4          # in-kernel upcast temp
    w_bytes = H * OUT_W * 4
    bias_bytes = 8 * OUT_W * 4
    out_bytes = max(8, b_tile) * OUT_W * 4
    acc_bytes = max(8, b_tile) * max(128, H) * 4
    vmem_needed = (2 * feat_tile_bytes + chunk_f32_bytes
                   + 2 * (w_bytes + bias_bytes) + 2 * out_bytes + acc_bytes)
    hard_cap = vmem_cap - vmem_cap // 8       # ~56 MiB on v7x, ~112 MiB v5e/v6e
    vmem_limit = max(4 << 20, min(int(vmem_needed * 1.25) + (2 << 20), hard_cap))

    # Memory-bound hint for XLA's scheduler around this custom call.
    cost = pl.CostEstimate(
        flops=B * S * H + 2 * B * H * OUT_W,
        transcendentals=0,
        bytes_accessed=B * S * H * itemsize + w_bytes + bias_bytes + B * OUT_W * 4,
    )

    kernel = functools.partial(_head_kernel, inv_seq_len=1.0 / S,
                               chunk_rows=chunk_rows)

    # NOTE(synk): w_eff/b_eff have constant index_maps (grid-resident); a
    # pl.Buffered(1) pipeline_mode would drop their duplicate buffer, but that
    # knob is not uniformly honored by top-level pallas_call, so the extra
    # copy is simply accounted for in vmem_limit above.
    out_padded = pl.pallas_call(
        kernel,
        out_shape=jax.ShapeDtypeStruct((B, OUT_W), jnp.float32),
        grid_spec=pltpu.PrefetchScalarGridSpec(
            num_scalar_prefetch=0,
            grid=grid,
            in_specs=[
                # streamed feature tiles
                pl.BlockSpec((b_tile, s_tile, H), lambda bi, si: (bi, si, 0)),
                # resident folded weight / bias (same block every step)
                pl.BlockSpec((H, OUT_W), lambda bi, si: (0, 0)),
                pl.BlockSpec((1, OUT_W), lambda bi, si: (0, 0)),
            ],
            out_specs=pl.BlockSpec((b_tile, OUT_W), lambda bi, si: (bi, 0)),
            scratch_shapes=[pltpu.VMEM((b_tile, H), jnp.float32)],
        ),
        compiler_params=pltpu.CompilerParams(
            dimension_semantics=("parallel", "arbitrary"),
            vmem_limit_bytes=vmem_limit,
        ),
        cost_estimate=cost,
    )(features, w_eff_p, b_eff_p)

    return out_padded[:, :n_out]


# ----------------------------------------------------------------------------
# Reference & test
# ----------------------------------------------------------------------------
def _reference(features, w_dense, b_dense, w_reg, b_reg):
    pooled = jnp.mean(features.astype(jnp.float32), axis=1)
    dense = pooled @ w_dense + b_dense
    return dense @ w_reg + b_reg     # dropout identity at eval; sum/5 cancels


if __name__ == "__main__":
    key = jax.random.PRNGKey(0)

    def make_case(k, B, S, H):
        k_feat, k_wd, k_bd, k_wr, k_br = jax.random.split(k, 5)
        bound = 1.0 / (H ** 0.5)
        feats = jax.random.normal(k_feat, (B, S, H), dtype=jnp.float32)
        w_dense = jax.random.uniform(k_wd, (H, H), jnp.float32, -bound, bound)
        b_dense = jax.random.uniform(k_bd, (1, H), jnp.float32, -bound, bound)
        w_reg = jax.random.uniform(k_wr, (H, 2), jnp.float32, -bound, bound)
        b_reg = jax.random.uniform(k_br, (1, 2), jnp.float32, -bound, bound)
        return feats, w_dense, b_dense, w_reg, b_reg

    k1, k2 = jax.random.split(key)

    # Case 1: module-sized shapes (batch=2, seq=8, hidden=32); single grid step.
    args1 = make_case(k1, 2, 8, 32)
    out1 = jax.block_until_ready(classification_head(*args1))
    assert out1.shape == (2, 2)
    assert jnp.allclose(out1, _reference(*args1), atol=1e-4, rtol=1e-4)

    # Case 2: tiny tile budget forces a multi-step seq reduction and exercises
    # the chunked in-kernel accumulation loop (grid=(1,4), 2 chunks/tile).
    args2 = make_case(k2, 8, 64, 128)
    out2 = jax.block_until_ready(
        classification_head(*args2, feat_tile_budget_bytes=64 << 10))
    assert out2.shape == (8, 2)
    assert jnp.allclose(out2, _reference(*args2), atol=1e-4, rtol=1e-4)

    print("KERNEL_OK")
</pallas_src>

<mosaic_0001>
module attributes {stable_mosaic.version = 11 : i64} {
  func.func @_head_kernel(%arg0: i32, %arg1: i32, %arg2: memref<2x8x32xf32, #tpu.memory_space<vmem>>, %arg3: memref<32x128xf32, #tpu.memory_space<vmem>>, %arg4: memref<1x128xf32, #tpu.memory_space<vmem>>, %arg5: memref<2x128xf32, #tpu.memory_space<vmem>>, %arg6: memref<2x32xf32, #tpu.memory_space<vmem>>) attributes {dimension_semantics = [#tpu.dimension_semantics<parallel>, #tpu.dimension_semantics<arbitrary>], iteration_bounds = array<i64: 1, 1>, scalar_prefetch = 0 : i64, scratch_operands = 1 : i64, tpu.core_type = #tpu.core_type<tc>, window_params = [{transform_indices = @transform_0, window_bounds = array<i64: 2, 8, 32>}, {pipeline_mode = #tpu.pipeline_mode<synchronous>, transform_indices = @transform_1, window_bounds = array<i64: 32, 128>}, {pipeline_mode = #tpu.pipeline_mode<synchronous>, transform_indices = @transform_2, window_bounds = array<i64: 1, 128>}, {transform_indices = @transform_3, window_bounds = array<i64: 2, 128>}]} {
    %c0_i32 = arith.constant 0 : i32
    %0 = arith.cmpi eq, %arg1, %c0_i32 : i32
    %1 = arith.extui %0 : i1 to i32
    %c0_i32_0 = arith.constant 0 : i32
    %2 = arith.cmpi ne, %1, %c0_i32_0 : i32
    scf.if %2 {
      %cst_9 = arith.constant 0.000000e+00 : f32
      %11 = vector.broadcast %cst_9 : f32 to vector<2x32xf32>
      %c0_10 = arith.constant 0 : index
      %c0_11 = arith.constant 0 : index
      %12 = vector.load %arg6[%c0_10, %c0_11] : memref<2x32xf32, #tpu.memory_space<vmem>>, vector<2x32xf32>
      tpu.vector_store %arg6[%c0_10, %c0_11], %11 {strides = array<i32>} : memref<2x32xf32, #tpu.memory_space<vmem>>, vector<2x32xf32>,
    } else {
    }
    %c0 = arith.constant 0 : index
    %c0_1 = arith.constant 0 : index
    %3 = vector.load %arg6[%c0, %c0_1] : memref<2x32xf32, #tpu.memory_space<vmem>>, vector<2x32xf32>
    %c0_2 = arith.constant 0 : index
    %c0_3 = arith.constant 0 : index
    %c0_4 = arith.constant 0 : index
    %4 = vector.load %arg2[%c0_2, %c0_3, %c0_4] : memref<2x8x32xf32, #tpu.memory_space<vmem>>, vector<2x8x32xf32>
    %cst = arith.constant dense<0.000000e+00> : vector<2x32xf32>
    %5 = vector.multi_reduction <add>, %4, %cst [1] : vector<2x8x32xf32> to vector<2x32xf32>
    %6 = arith.addf %3, %5 : vector<2x32xf32>
    %c0_5 = arith.constant 0 : index
    %c0_6 = arith.constant 0 : index
    %7 = vector.load %arg6[%c0_5, %c0_6] : memref<2x32xf32, #tpu.memory_space<vmem>>, vector<2x32xf32>
    tpu.vector_store %arg6[%c0_5, %c0_6], %6 {strides = array<i32>} : memref<2x32xf32, #tpu.memory_space<vmem>>, vector<2x32xf32>,
    %c0_i32_7 = arith.constant 0 : i32
    %8 = arith.cmpi eq, %arg1, %c0_i32_7 : i32
    %9 = arith.extui %8 : i1 to i32
    %c0_i32_8 = arith.constant 0 : i32
    %10 = arith.cmpi ne, %9, %c0_i32_8 : i32
    scf.if %10 {
      %c0_9 = arith.constant 0 : index
      %c0_10 = arith.constant 0 : index
      %11 = vector.load %arg6[%c0_9, %c0_10] : memref<2x32xf32, #tpu.memory_space<vmem>>, vector<2x32xf32>
      %cst_11 = arith.constant 1.250000e-01 : f32
      %12 = vector.broadcast %cst_11 : f32 to vector<2x32xf32>
      %13 = arith.mulf %11, %12 : vector<2x32xf32>
      %c0_12 = arith.constant 0 : index
      %c0_13 = arith.constant 0 : index
      %14 = vector.load %arg3[%c0_12, %c0_13] : memref<32x128xf32, #tpu.memory_space<vmem>>, vector<32x128xf32>
      %cst_14 = arith.constant dense<0.000000e+00> : vector<2x128xf32>
      %15 = tpu.matmul %13, %14, %cst_14 {dimension_numbers = #tpu.dot_dimension_numbers<[1], [0], [0], [1], [0, 0, 1, 1], [], []>} : vector<2x32xf32>, vector<32x128xf32>, vector<2x128xf32> -> vector<2x128xf32>
      %c0_15 = arith.constant 0 : index
      %c0_16 = arith.constant 0 : index
      %16 = vector.load %arg4[%c0_15, %c0_16] : memref<1x128xf32, #tpu.memory_space<vmem>>, vector<1x128xf32>
      %17 = vector.broadcast %16 : vector<1x128xf32> to vector<2x128xf32>
      %18 = arith.addf %15, %17 : vector<2x128xf32>
      %c0_17 = arith.constant 0 : index
      %c0_18 = arith.constant 0 : index
      %19 = vector.load %arg5[%c0_17, %c0_18] : memref<2x128xf32, #tpu.memory_space<vmem>>, vector<2x128xf32>
      tpu.vector_store %arg5[%c0_17, %c0_18], %18 {strides = array<i32>} : memref<2x128xf32, #tpu.memory_space<vmem>>, vector<2x128xf32>,
    } else {
    }
    return
  }
  func.func @transform_0(%arg0: i32, %arg1: i32) -> (i32, i32, i32) {
    %c0_i32 = arith.constant 0 : i32
    %c0_i32_0 = arith.constant 0 : i32
    return %arg0, %arg1, %c0_i32 : i32, i32, i32
  }
  func.func @transform_1(%arg0: i32, %arg1: i32) -> (i32, i32) {
    %c0_i32 = arith.constant 0 : i32
    %c0_i32_0 = arith.constant 0 : i32
    %c0_i32_1 = arith.constant 0 : i32
    return %c0_i32, %c0_i32_0 : i32, i32
  }
  func.func @transform_2(%arg0: i32, %arg1: i32) -> (i32, i32) {
    %c0_i32 = arith.constant 0 : i32
    %c0_i32_0 = arith.constant 0 : i32
    %c0_i32_1 = arith.constant 0 : i32
    return %c0_i32, %c0_i32_0 : i32, i32
  }
  func.func @transform_3(%arg0: i32, %arg1: i32) -> (i32, i32) {
    %c0_i32 = arith.constant 0 : i32
    %c0_i32_0 = arith.constant 0 : i32
    return %arg0, %c0_i32 : i32, i32
  }
}

</mosaic_0001>

<bundles_post_ra>
// kernel: tpu_custom_call.1
= control target key start
LH: loop header
LB: loop body
LE: loop exit
PB: predicated region body
PF: predicated region fallthrough
CT: control target
= control target key end

     0   :  { %8 = vsyncpa [#allocation4], 0  ;;  %s263_s0 = inlined_call_operand.hbm [shape: f32[2,8,32], index: 0, kind: input, shape index: {}]   ;;  %s264_s1 = inlined_call_operand.hbm [shape: f32[32,128], index: 1, kind: input, shape index: {}]   ;;  %s265_s2 = inlined_call_operand.vmem [shape: f32[1,128], index: 2, kind: input, shape index: {}]   ;;  %s266_s3 = inlined_call_operand.hbm [shape: f32[2,128], index: 3, kind: output, shape index: {}]  }
   0x1   :  { %9 = vsyncpa [#allocation7], 0 }
   0x2   :  { %10 = vsyncpa [#allocation5], 0  ;;  %s15_s14 = sshll.u32 %s263_s0, 4  ;;  %s220_s15 = smov [#allocation3]   ;;  %s16_s14 = int_to_ptr.hbm [resolvable:$true] %s15_s14 }
   0x3   :  { %s17_s16 = sshll.u32 %s220_s15, 4  ;;  %s28_s19 = sshll.u32 %s264_s1, 4  ;;  %s18_s16 = int_to_ptr.vmem [resolvable:$true] %s17_s16  ;;  %s29_s19 = int_to_ptr.hbm [resolvable:$true] %s28_s19 }
   0x4   :  { %s221_s20 = smov 128   ;;  %s222_s21 = smov 8  }
   0x5   :  { %23 = dma.hbm_to_vmem [thread:$0]  %s16_s14, 256, %s18_s16, [#allocation4], %s221_s20, %s221_s20, %s222_s21  }
   0x6   :  { %s223_s22 = smov [#allocation6]  }
   0x7   :  { %s30_s23 = sshll.u32 %s223_s22, 4  ;;  %s31_s23 = int_to_ptr.vmem [resolvable:$true] %s30_s23 }
   0x8   :  { %36 = dma.hbm_to_vmem [thread:$0]  %s29_s19, 512, %s31_s23, [#allocation7], %s221_s20, %s221_s20, %s222_s21  }
   0x9   :  { %214 = dma.done.wait [#allocation4], 256  }
   0xa   :  { %215 = vsyncadd [#allocation4], 4294967040 }
   0xb   :  { %216 = dma.done.wait [#allocation7], 512  }
   0xc   :  { %217 = vsyncadd [#allocation7], 4294966784  ;;  %vm51_vm0 = vcmask 254976   ;;  %v224_v0 = vmov 0.0   ;;  %vm56_vm1 = vcmask 261120   ;;  %v87_v1 = vld [vmem:[#allocation6 + $0x18] sm:$0xff] }
   0xd   :  { %52 = vst.msk [vmem:[#allocation2] sm:$0x3] %vm51_vm0, %v224_v0  ;;  %v86_v2 = vld [vmem:[#allocation6 + $0x10] sm:$0xff]  ;;  %107 = vmatpush.msra.mxu0 %v87_v1  ;;  %v85_v4 = vld [vmem:[#allocation6 + $0x8] sm:$0xff]  ;;  %v55_v5 = vld [vmem:[#allocation3 + $0x8] sm:$0xff]  ;;  %vm73_vm2 = vcmask 1041409  }
   0xe   :  { %v54_v3 = vld [vmem:[#allocation3] sm:$0xff]  ;;  %v64_v8 = vsel %vm56_vm1, %v55_v5, 0.0  ;;  %v84_v9 = vld [vmem:[#allocation6] sm:$0xff]  ;;  %v141_v26 = vld [vmem:[%s265_s2] ss:$0 sm:$0xff]  ;;  %s225_s24 = smov [#allocation8]  }
   0xf   :  { %v57_v6 = vsel %vm56_vm1, %v54_v3, 0.0  ;;  %108 = vmatpush.msra.mxu0 %v86_v2  ;;  %v65_v10 = vrot.slane %v64_v8, 4  ;;  %s121_s25 = sshll.u32 %s225_s24, 4  ;;  %s123_s28 = sshll.u32 %s266_s3, 4  ;;  %s122_s25 = int_to_ptr.vmem [resolvable:$true] %s121_s25  ;;  %s124_s28 = int_to_ptr.hbm [resolvable:$true] %s123_s28 }
  0x10   :  { %v58_v7 = vrot.slane %v57_v6, 4 }
  0x11   :  { %109 = vmatpush.msra.mxu0 %v85_v4  ;;  %v66_v12 = vadd.f32 %v65_v10, %v64_v8 }
  0x12   :  { %v59_v11 = vadd.f32 %v58_v7, %v57_v6 }
  0x13   :  { %110 = vmatpush.msra.mxu0 %v84_v9  ;;  %v67_v14 = vrot.slane %v66_v12, 2 }
  0x14   :  { %v60_v13 = vrot.slane %v59_v11, 2  ;;  %v53_v20 = vld [vmem:[#allocation2] sm:$0x3] }
  0x15   :  { %v68_v16 = vadd.f32 %v67_v14, %v66_v12 }
  0x16   :  { %v61_v15 = vadd.f32 %v60_v13, %v59_v11 }
  0x17   :  { %v69_v18 = vrot.slane %v68_v16, 1 }
  0x18   :  { %v62_v17 = vrot.slane %v61_v15, 1 }
  0x19   :  { %v70_v21 = vadd.f32 %v69_v18, %v68_v16 }
  0x1a   :  { %v63_v19 = vadd.f32 %v62_v17, %v61_v15 }
  0x1c   :  { %v74_v22 = vsel %vm73_vm2, %v70_v21, %v63_v19 }
  0x1d   :  { %v76_v23 = vadd.f32 %v74_v22, %v53_v20 }
  0x1f   :  { %78 = vst.msk [vmem:[#allocation2] sm:$0x3] %vm51_vm0, %v76_v23 }
  0x26   :  { %v82_v24 = vld [vmem:[#allocation2] sm:$0x3] }
  0x27   :  { %v83_v25 = vmul.f32 0.125, %v82_v24 }
  0x29   :  { %134 = vmatmul.msk.f32.vlgmr.msra.gmra.mxu0 %vm56_vm1, %v83_v25 }
  0xa6   :  { %v112_v27 = vpop.f32.mrf.mxu0 }
  0xa7   :  { %v113_v28 = vadd.f32 %v141_v26, %v112_v27 }
  0xa9   :  { %115 = vst [vmem:[#allocation8] sm:$0x3] %v113_v28 }
  0xaa   :  { %126 = dma.vmem_to_hbm [thread:$0]  %s122_s25, 32, %s124_s28, [#allocation5]  }
  0xab   :  { %218 = dma.done.wait [#allocation5], 32  }
  0xac   :  { %219 = vsyncadd [#allocation5], 4294967264 }
  0xad   :  { %131 = vsyncpa [#allocation4], 1 }
  0xae   :  { %132 = vsyncpa [#allocation7], 1 }
  0xaf   :  { %133 = vsyncpa [#allocation5], 1 }

</bundles_post_ra>
